<compile_context>
chip_gen: v5e
topology: v5e:2x2
jax: 0.10.0
libtpu: 0.0.40
codegen_flags: <defaults>
</compile_context>

<pallas_src>
import functools

import jax
import jax.numpy as jnp
from jax.experimental import pallas as pl
from jax.experimental.pallas import tpu as pltpu


def _round_up(a, m):
    return (a + m - 1) // m * m


def _pick_tile(extent, candidates=(512, 256, 128)):
    for c in candidates:
        if c <= extent and extent % c == 0:
            return c
    return extent


# --------------------------------------------------------------------------
# Fast path: whole D resident in VMEM (single MXU call per token tile).
# --------------------------------------------------------------------------
def _residual_linear_kernel_fulld(x_ref, w_ref, b_ref, o_ref, *, compute_dtype):
    # x_ref: (tm, Dp)   w_ref: (Dp, Dp)   b_ref: (1, Dp)   o_ref: (tm, Dp)
    x = x_ref[...]                                  # keep original dtype for residual
    acc = jnp.dot(x.astype(compute_dtype), w_ref[...],
                  preferred_element_type=jnp.float32)
    o_ref[...] = (acc + b_ref[...].astype(jnp.float32)
                  + x.astype(jnp.float32)).astype(o_ref.dtype)


# --------------------------------------------------------------------------
# Tiled path: K-streamed weight with an f32 VMEM accumulator (large D).
# --------------------------------------------------------------------------
def _residual_linear_kernel_tiled(x_ref, w_ref, b_ref, o_ref, acc_ref, *,
                                  compute_dtype):
    # x_ref: (tm, td) K-slice of tokens   w_ref: (td, td) weight tile
    # b_ref: (1, td) bias slice           o_ref: (tm, td) output tile
    # acc_ref: (tm, td) f32 accumulator (persists across the K grid axis)
    j = pl.program_id(1)            # output-column (N) block index
    k = pl.program_id(2)            # reduction (K) block index
    nk = pl.num_programs(2)

    @pl.when(k == 0)
    def _init():
        acc_ref[...] = jnp.zeros_like(acc_ref)

    x = x_ref[...]
    acc_ref[...] += jnp.dot(x.astype(compute_dtype), w_ref[...],
                            preferred_element_type=jnp.float32)

    # Residual add: the weight is square and tn == tk, so the K block with
    # k == j holds exactly the x columns aligned with this output tile.
    @pl.when(k == j)
    def _residual():
        acc_ref[...] += x.astype(jnp.float32)

    @pl.when(k == nk - 1)
    def _finalize():
        o_ref[...] = (acc_ref[...] + b_ref[...].astype(jnp.float32)).astype(o_ref.dtype)


def _fulld_vmem_bytes(tm, dp, x_itemsize, w_itemsize, o_itemsize):
    return (2 * tm * dp * x_itemsize        # x tile, double-buffered
            + 2 * tm * dp * o_itemsize      # out tile, double-buffered
            + 2 * dp * dp * w_itemsize      # weight (budget 2x to be safe)
            + 2 * 8 * dp * 4)               # bias (sublane padded)


def residual_linear(x, w, b, *, tm=512, td=None, compute_dtype=None,
                    path=None, vmem_budget_bytes=24 * 1024 * 1024):
    """Fused Residual(Linear): out = (x @ w + b) + x.

    x: (B, N, D)   w: (D, D) pre-transposed to (in, out)   b: (D,)
    compute_dtype: dtype of the MXU matmul operands (e.g. jnp.bfloat16 on
      v6e/v7x). Accumulation, bias and the residual add are always f32 and
      the residual uses the unconverted x.
    path: None (auto) | "full" | "tiled".
    """
    B, N, D = x.shape
    assert w.shape == (D, D) and b.shape == (D,)
    M = B * N
    if compute_dtype is None:
        compute_dtype = x.dtype

    # Lane-dense layout: pad D up to a multiple of 128.
    Dp = _round_up(D, 128)
    x_itemsize = x.dtype.itemsize
    w_itemsize = jnp.dtype(compute_dtype).itemsize
    o_itemsize = x_itemsize

    # ----- choose path & token tile -----
    m8 = _round_up(M, 8)
    tm_cands = sorted({min(tm, m8), 512, 256, 128, 64, 32, 16, 8}, reverse=True)
    tm_cands = [t for t in tm_cands if 0 < t <= m8 and t % 8 == 0]

    use_full = None
    tm_full = None
    for t in tm_cands:
        if _fulld_vmem_bytes(t, Dp, x_itemsize, w_itemsize, o_itemsize) <= vmem_budget_bytes:
            tm_full = t
            break
    if path == "full":
        assert tm_full is not None, "full-D path does not fit VMEM budget"
        use_full = True
    elif path == "tiled":
        use_full = False
    else:
        use_full = tm_full is not None

    if use_full:
        tm = tm_full
    else:
        tm = min(tm, m8)
    Mp = _round_up(M, tm)

    # ----- pad operands (padding is zeros -> exact semantics after slicing) -----
    x2 = x.reshape(M, D)
    wp = w
    bp = b.reshape(1, D)
    if Dp != D:
        x2 = jnp.pad(x2, ((0, 0), (0, Dp - D)))
        wp = jnp.pad(wp, ((0, Dp - D), (0, Dp - D)))
        bp = jnp.pad(bp, ((0, 0), (0, Dp - D)))
    if Mp != M:
        x2 = jnp.pad(x2, ((0, Mp - M), (0, 0)))
    # Pre-cast only the weight (halves its HBM traffic / VMEM footprint on the
    # bf16 path); x keeps its dtype so the residual term is exact.
    wp = wp.astype(compute_dtype)

    flops = 2 * Mp * Dp * Dp

    if use_full:
        kernel = functools.partial(_residual_linear_kernel_fulld,
                                   compute_dtype=compute_dtype)
        bytes_accessed = (x2.size * x_itemsize + wp.size * w_itemsize
                          + bp.size * bp.dtype.itemsize + Mp * Dp * o_itemsize)
        out = pl.pallas_call(
            kernel,
            out_shape=jax.ShapeDtypeStruct((Mp, Dp), x.dtype),
            grid_spec=pltpu.PrefetchScalarGridSpec(
                num_scalar_prefetch=0,
                grid=(Mp // tm,),
                in_specs=[
                    pl.BlockSpec((tm, Dp), lambda i: (i, 0)),    # x token slab
                    pl.BlockSpec((Dp, Dp), lambda i: (0, 0)),    # whole weight
                    pl.BlockSpec((1, Dp), lambda i: (0, 0)),     # bias
                ],
                out_specs=pl.BlockSpec((tm, Dp), lambda i: (i, 0)),
                scratch_shapes=[],
            ),
            compiler_params=pltpu.CompilerParams(
                dimension_semantics=("parallel",),
            ),
            cost_estimate=pl.CostEstimate(
                flops=flops, transcendentals=0, bytes_accessed=bytes_accessed),
        )(x2, wp, bp)
    else:
        if td is None:
            td = _pick_tile(Dp)
        assert Dp % td == 0
        kernel = functools.partial(_residual_linear_kernel_tiled,
                                   compute_dtype=compute_dtype)
        grid = (Mp // tm, Dp // td, Dp // td)
        bytes_accessed = (
            x2.size * x_itemsize * (Dp // td)      # x re-read per output-col block
            + wp.size * w_itemsize * (Mp // tm)    # weight re-read per token slab
            + bp.size * bp.dtype.itemsize
            + Mp * Dp * o_itemsize)
        out = pl.pallas_call(
            kernel,
            out_shape=jax.ShapeDtypeStruct((Mp, Dp), x.dtype),
            grid_spec=pltpu.PrefetchScalarGridSpec(
                num_scalar_prefetch=0,
                grid=grid,
                in_specs=[
                    pl.BlockSpec((tm, td), lambda i, j, k: (i, k)),   # x K-tile
                    pl.BlockSpec((td, td), lambda i, j, k: (k, j)),   # weight tile
                    pl.BlockSpec((1, td), lambda i, j, k: (0, j)),    # bias slice
                ],
                out_specs=pl.BlockSpec((tm, td), lambda i, j, k: (i, j)),
                scratch_shapes=[pltpu.VMEM((tm, td), jnp.float32)],
            ),
            compiler_params=pltpu.CompilerParams(
                dimension_semantics=("parallel", "parallel", "arbitrary"),
            ),
            cost_estimate=pl.CostEstimate(
                flops=flops, transcendentals=0, bytes_accessed=bytes_accessed),
        )(x2, wp, bp)

    if Mp != M or Dp != D:
        out = out[:M, :D]
    return out.reshape(B, N, D)


def reference(x, w, b):
    return (x @ w + b) + x


if __name__ == "__main__":
    key = jax.random.PRNGKey(0)
    kx, kw, kb = jax.random.split(key, 3)

    # Small shapes consistent with the wrapped module: batch=2, seq=8, hidden=32.
    B, N, D = 2, 8, 32
    x = jax.random.normal(kx, (B, N, D), dtype=jnp.float32)
    # Deterministic "Linear(dim, dim)" params (weight pre-transposed to in x out).
    w = jax.random.normal(kw, (D, D), dtype=jnp.float32) * 0.05
    b = jax.random.normal(kb, (D,), dtype=jnp.float32) * 0.05

    ref = reference(x, w, b)

    # 1) f32 fast path (whole weight resident, no K loop) -- exact tolerance.
    out = jax.block_until_ready(residual_linear(x, w, b))
    assert out.shape == x.shape
    assert jnp.allclose(out, ref, atol=1e-5, rtol=1e-5), "f32 fast path mismatch"

    # 2) bf16 MXU fast path (v6e/v7x): bf16 tolerance on the matmul term only.
    out_bf16 = jax.block_until_ready(
        residual_linear(x, w, b, compute_dtype=jnp.bfloat16))
    assert jnp.allclose(out_bf16, ref, atol=5e-2, rtol=5e-2), "bf16 path mismatch"

    # 3) Tiled fallback exercised explicitly with a larger D and 2 K-blocks.
    D2 = 256
    kx2, kw2, kb2 = jax.random.split(jax.random.PRNGKey(1), 3)
    x2 = jax.random.normal(kx2, (B, N, D2), dtype=jnp.float32)
    w2 = jax.random.normal(kw2, (D2, D2), dtype=jnp.float32) * 0.02
    b2 = jax.random.normal(kb2, (D2,), dtype=jnp.float32) * 0.02
    ref2 = reference(x2, w2, b2)
    out2 = jax.block_until_ready(
        residual_linear(x2, w2, b2, path="tiled", td=128))
    assert jnp.allclose(out2, ref2, atol=1e-4, rtol=1e-4), "tiled path mismatch"

    print("KERNEL_OK")
</pallas_src>

<mosaic_0001>
module attributes {stable_mosaic.version = 11 : i64} {
  func.func @_residual_linear_kernel_fulld(%arg0: i32, %arg1: memref<16x128xf32, #tpu.memory_space<vmem>>, %arg2: memref<128x128xf32, #tpu.memory_space<vmem>>, %arg3: memref<1x128xf32, #tpu.memory_space<vmem>>, %arg4: memref<16x128xf32, #tpu.memory_space<vmem>>) attributes {dimension_semantics = [#tpu.dimension_semantics<parallel>], iteration_bounds = array<i64: 1>, scalar_prefetch = 0 : i64, scratch_operands = 0 : i64, tpu.core_type = #tpu.core_type<tc>, window_params = [{transform_indices = @transform_0, window_bounds = array<i64: 16, 128>}, {pipeline_mode = #tpu.pipeline_mode<synchronous>, transform_indices = @transform_1, window_bounds = array<i64: 128, 128>}, {pipeline_mode = #tpu.pipeline_mode<synchronous>, transform_indices = @transform_2, window_bounds = array<i64: 1, 128>}, {transform_indices = @transform_3, window_bounds = array<i64: 16, 128>}]} {
    %c0 = arith.constant 0 : index
    %c0_0 = arith.constant 0 : index
    %0 = vector.load %arg1[%c0, %c0_0] : memref<16x128xf32, #tpu.memory_space<vmem>>, vector<16x128xf32>
    %c0_1 = arith.constant 0 : index
    %c0_2 = arith.constant 0 : index
    %1 = vector.load %arg2[%c0_1, %c0_2] : memref<128x128xf32, #tpu.memory_space<vmem>>, vector<128x128xf32>
    %cst = arith.constant dense<0.000000e+00> : vector<16x128xf32>
    %2 = tpu.matmul %0, %1, %cst {dimension_numbers = #tpu.dot_dimension_numbers<[1], [0], [0], [1], [0, 0, 1, 1], [], []>} : vector<16x128xf32>, vector<128x128xf32>, vector<16x128xf32> -> vector<16x128xf32>
    %c0_3 = arith.constant 0 : index
    %c0_4 = arith.constant 0 : index
    %3 = vector.load %arg3[%c0_3, %c0_4] : memref<1x128xf32, #tpu.memory_space<vmem>>, vector<1x128xf32>
    %4 = vector.broadcast %3 : vector<1x128xf32> to vector<16x128xf32>
    %5 = arith.addf %2, %4 : vector<16x128xf32>
    %6 = arith.addf %5, %0 : vector<16x128xf32>
    %c0_5 = arith.constant 0 : index
    %c0_6 = arith.constant 0 : index
    %7 = vector.load %arg4[%c0_5, %c0_6] : memref<16x128xf32, #tpu.memory_space<vmem>>, vector<16x128xf32>
    tpu.vector_store %arg4[%c0_5, %c0_6], %6 {strides = array<i32>} : memref<16x128xf32, #tpu.memory_space<vmem>>, vector<16x128xf32>,
    return
  }
  func.func @transform_0(%arg0: i32) -> (i32, i32) {
    %c0_i32 = arith.constant 0 : i32
    %c0_i32_0 = arith.constant 0 : i32
    return %arg0, %c0_i32 : i32, i32
  }
  func.func @transform_1(%arg0: i32) -> (i32, i32) {
    %c0_i32 = arith.constant 0 : i32
    %c0_i32_0 = arith.constant 0 : i32
    %c0_i32_1 = arith.constant 0 : i32
    return %c0_i32, %c0_i32_0 : i32, i32
  }
  func.func @transform_2(%arg0: i32) -> (i32, i32) {
    %c0_i32 = arith.constant 0 : i32
    %c0_i32_0 = arith.constant 0 : i32
    %c0_i32_1 = arith.constant 0 : i32
    return %c0_i32, %c0_i32_0 : i32, i32
  }
  func.func @transform_3(%arg0: i32) -> (i32, i32) {
    %c0_i32 = arith.constant 0 : i32
    %c0_i32_0 = arith.constant 0 : i32
    return %arg0, %c0_i32 : i32, i32
  }
}

</mosaic_0001>

<bundles_post_ra>
// kernel: tpu_custom_call.1
= control target key start
LH: loop header
LB: loop body
LE: loop exit
PB: predicated region body
PF: predicated region fallthrough
CT: control target
= control target key end

     0   :  { %8 = vsyncpa [#allocation3], 0  ;;  %s262_s0 = inlined_call_operand.hbm [shape: f32[16,128], index: 0, kind: input, shape index: {}]   ;;  %s263_s1 = inlined_call_operand.hbm [shape: f32[128,128], index: 1, kind: input, shape index: {}]   ;;  %s264_s2 = inlined_call_operand.vmem [shape: f32[1,128], index: 2, kind: input, shape index: {}]   ;;  %s265_s3 = inlined_call_operand.hbm [shape: f32[16,128], index: 3, kind: output, shape index: {}]  }
   0x1   :  { %9 = vsyncpa [#allocation6], 0 }
   0x2   :  { %10 = vsyncpa [#allocation4], 0  ;;  %s15_s14 = sshll.u32 %s262_s0, 4  ;;  %s216_s15 = smov [#allocation2]   ;;  %s16_s14 = int_to_ptr.hbm [resolvable:$true] %s15_s14 }
   0x3   :  { %s17_s16 = sshll.u32 %s216_s15, 4  ;;  %s28_s19 = sshll.u32 %s263_s1, 4  ;;  %s18_s16 = int_to_ptr.vmem [resolvable:$true] %s17_s16  ;;  %s29_s19 = int_to_ptr.hbm [resolvable:$true] %s28_s19 }
   0x4   :  { %s217_s20 = smov 128   ;;  %s218_s21 = smov 8  }
   0x5   :  { %23 = dma.hbm_to_vmem [thread:$0]  %s16_s14, 256, %s18_s16, [#allocation3], %s217_s20, %s217_s20, %s218_s21  }
   0x6   :  { %s219_s22 = smov [#allocation5]  }
   0x7   :  { %s30_s23 = sshll.u32 %s219_s22, 4  ;;  %s31_s23 = int_to_ptr.vmem [resolvable:$true] %s30_s23 }
   0x8   :  { %36 = dma.hbm_to_vmem [thread:$0]  %s29_s19, 2048, %s31_s23, [#allocation6], %s217_s20, %s217_s20, %s218_s21  }
   0x9   :  { %210 = dma.done.wait [#allocation3], 256  }
   0xa   :  { %211 = vsyncadd [#allocation3], 4294967040 }
   0xb   :  { %212 = dma.done.wait [#allocation6], 2048  }
   0xc   :  { %213 = vsyncadd [#allocation6], 4294965248  ;;  %v64_v0 = vld [vmem:[#allocation5 + $0x78] sm:$0xff]  ;;  %v63_v1 = vld [vmem:[#allocation5 + $0x70] sm:$0xff]  ;;  %s220_s24 = smov [#allocation7]   ;;  %s102_s28 = sshll.u32 %s265_s3, 4  ;;  %s103_s28 = int_to_ptr.hbm [resolvable:$true] %s102_s28 }
   0xd   :  { %69 = vmatpush.msra.mxu0 %v64_v0  ;;  %116 = vmatpush.msra.mxu1 %v64_v0  ;;  %v62_v2 = vld [vmem:[#allocation5 + $0x68] sm:$0xff]  ;;  %v61_v3 = vld [vmem:[#allocation5 + $0x60] sm:$0xff]  ;;  %v60_v4 = vld [vmem:[#allocation5 + $0x58] sm:$0xff]  ;;  %s100_s25 = sshll.u32 %s220_s24, 4  ;;  %s101_s25 = int_to_ptr.vmem [resolvable:$true] %s100_s25 }
   0xe   :  { %v59_v5 = vld [vmem:[#allocation5 + $0x50] sm:$0xff]  ;;  %v58_v6 = vld [vmem:[#allocation5 + $0x48] sm:$0xff]  ;;  %v57_v7 = vld [vmem:[#allocation5 + $0x40] sm:$0xff] }
   0xf   :  { %70 = vmatpush.msra.mxu0 %v63_v1  ;;  %117 = vmatpush.msra.mxu1 %v63_v1  ;;  %v56_v8 = vld [vmem:[#allocation5 + $0x38] sm:$0xff]  ;;  %v55_v9 = vld [vmem:[#allocation5 + $0x30] sm:$0xff]  ;;  %v54_v10 = vld [vmem:[#allocation5 + $0x28] sm:$0xff] }
  0x10   :  { %v53_v11 = vld [vmem:[#allocation5 + $0x20] sm:$0xff]  ;;  %v52_v12 = vld [vmem:[#allocation5 + $0x18] sm:$0xff]  ;;  %v51_v13 = vld [vmem:[#allocation5 + $0x10] sm:$0xff] }
  0x11   :  { %71 = vmatpush.msra.mxu0 %v62_v2  ;;  %118 = vmatpush.msra.mxu1 %v62_v2  ;;  %v50_v14 = vld [vmem:[#allocation5 + $0x8] sm:$0xff]  ;;  %v49_v15 = vld [vmem:[#allocation5] sm:$0xff]  ;;  %v47_v16 = vld [vmem:[#allocation2] sm:$0xff] }
  0x12   :  { %v48_v17 = vld [vmem:[#allocation2 + $0x8] sm:$0xff]  ;;  %v137_v18 = vld [vmem:[%s264_s2] ss:$0 sm:$0xff] }
  0x13   :  { %72 = vmatpush.msra.mxu0 %v61_v3  ;;  %119 = vmatpush.msra.mxu1 %v61_v3 }
  0x15   :  { %73 = vmatpush.msra.mxu0 %v60_v4  ;;  %120 = vmatpush.msra.mxu1 %v60_v4 }
  0x17   :  { %74 = vmatpush.msra.mxu0 %v59_v5  ;;  %121 = vmatpush.msra.mxu1 %v59_v5 }
  0x19   :  { %75 = vmatpush.msra.mxu0 %v58_v6  ;;  %122 = vmatpush.msra.mxu1 %v58_v6 }
  0x1b   :  { %76 = vmatpush.msra.mxu0 %v57_v7  ;;  %123 = vmatpush.msra.mxu1 %v57_v7 }
  0x1d   :  { %77 = vmatpush.msra.mxu0 %v56_v8  ;;  %124 = vmatpush.msra.mxu1 %v56_v8 }
  0x1f   :  { %78 = vmatpush.msra.mxu0 %v55_v9  ;;  %125 = vmatpush.msra.mxu1 %v55_v9 }
  0x21   :  { %79 = vmatpush.msra.mxu0 %v54_v10  ;;  %126 = vmatpush.msra.mxu1 %v54_v10 }
  0x23   :  { %80 = vmatpush.msra.mxu0 %v53_v11  ;;  %127 = vmatpush.msra.mxu1 %v53_v11 }
  0x25   :  { %81 = vmatpush.msra.mxu0 %v52_v12  ;;  %128 = vmatpush.msra.mxu1 %v52_v12 }
  0x27   :  { %82 = vmatpush.msra.mxu0 %v51_v13  ;;  %129 = vmatpush.msra.mxu1 %v51_v13 }
  0x29   :  { %83 = vmatpush.msra.mxu0 %v50_v14  ;;  %130 = vmatpush.msra.mxu1 %v50_v14 }
  0x2b   :  { %84 = vmatpush.msra.mxu0 %v49_v15  ;;  %131 = vmatpush.msra.mxu1 %v49_v15 }
  0x2c   :  { %85 = vmatmul.f32.vlgmr.msra.gmra.mxu0 %v47_v16  ;;  %88 = vmatmul.f32.vlgmr.msra.gmra.mxu1 %v48_v17 }
  0xa9   :  { %v86_v19 = vpop.f32.mrf.mxu0  ;;  %v89_v20 = vpop.f32.mrf.mxu1 }
  0xaa   :  { %v87_v21 = vadd.f32 %v137_v18, %v86_v19  ;;  %v90_v22 = vadd.f32 %v137_v18, %v89_v20 }
  0xac   :  { %v92_v23 = vadd.f32 %v87_v21, %v47_v16  ;;  %v93_v24 = vadd.f32 %v90_v22, %v48_v17 }
  0xae   :  { %94 = vst [vmem:[#allocation7] sm:$0xff] %v92_v23 }
  0xaf   :  { %95 = vst [vmem:[#allocation7 + $0x8] sm:$0xff] %v93_v24 }
  0xb0   :  { %108 = dma.vmem_to_hbm [thread:$0]  %s101_s25, 256, %s103_s28, [#allocation4], %s217_s20, %s217_s20, %s218_s21  }
  0xb1   :  { %214 = dma.done.wait [#allocation4], 256  }
  0xb2   :  { %215 = vsyncadd [#allocation4], 4294967040 }
  0xb3   :  { %113 = vsyncpa [#allocation3], 1 }
  0xb4   :  { %114 = vsyncpa [#allocation6], 1 }
  0xb5   :  { %115 = vsyncpa [#allocation4], 1 }

</bundles_post_ra>
